<compile_context>
chip_gen: v7x
topology: tpu7x:2x2x1
jax: 0.10.0
libtpu: 0.0.40
codegen_flags: <defaults>
</compile_context>

<pallas_src>
import jax
import jax.numpy as jnp
import numpy as np
from jax.experimental import pallas as pl
from jax.experimental.pallas import tpu as pltpu

LN_EPS = 1e-5  # PyTorch nn.LayerNorm default


def _conv_ln_relu(band, taps_ref, w_ref, ml_ref, mr_ref, p_ref, g_ref, be_ref,
                  W, out_dtype):
    """Fused conv3x3 + LayerNorm(W) + ReLU on one flattened row band.

    band     : (Cp, Lband) f32 value; Lband >= (TH+2)*W + 2, layout
               band[c, 1 + r*W + w] = x_padded_rows[c, r, w], band[:,0]=0 pad.
    taps_ref : (9*Cp + 8, THW) VMEM scratch for the fused-matmul RHS.
    w_ref    : (Cp, 9*Cp + 8) fused conv weight (+ bias column at 9*Cp).
    ml_ref   : (1, THW) 0/1 mask zeroing wrapped values of the w-1 column tap.
    mr_ref   : (1, THW) 0/1 mask zeroing wrapped values of the w+1 column tap.
    p_ref    : (THW, THW) block-averaging matrix (1/W inside each W segment).
    g_ref    : (1, THW) LayerNorm gamma tiled over the TH rows.
    be_ref   : (1, THW) LayerNorm beta  tiled over the TH rows.
    """
    Cp = band.shape[0]
    Kf, THW = taps_ref.shape
    ml = ml_ref[...]
    mr = mr_ref[...]

    # ---- assemble the (9*Cp + 8, THW) tap matrix in VMEM scratch ----
    for k in range(9):
        dh, dw = divmod(k, 3)
        start = dh * W + dw                       # static lane offset
        tap = band[:, start:start + THW]          # (Cp, THW)
        if dw == 0:                               # input column w-1: zero at w == 0
            tap = tap * ml
        elif dw == 2:                             # input column w+1: zero at w == W-1
            tap = tap * mr
        taps_ref[k * Cp:(k + 1) * Cp, :] = tap
    # ones block folds the conv bias into the same matmul (only col 9*Cp of the
    # fused weight is the bias; the remaining Kf-9*Cp-1 columns are zero).
    taps_ref[9 * Cp:Kf, :] = jnp.ones((Kf - 9 * Cp, THW), jnp.float32)

    # ---- one fused MXU dot: conv + bias ----
    y = jnp.dot(w_ref[...], taps_ref[...], preferred_element_type=jnp.float32)

    # ---- LayerNorm over each W-wide row segment (biased variance, PyTorch) ----
    mean_f = jnp.dot(y, p_ref[...], preferred_element_type=jnp.float32)
    cen = y - mean_f
    var_f = jnp.dot(cen * cen, p_ref[...], preferred_element_type=jnp.float32)
    out = cen * jax.lax.rsqrt(var_f + LN_EPS)
    out = out * g_ref[...] + be_ref[...]

    # ---- ReLU ----
    return jnp.maximum(out, 0.0).astype(out_dtype)


def identity_block_forward(x, conv_w, conv_b, gamma, beta, *, row_tile=None):
    """x: (N, C, H, W) f32; conv_w: (C, C, 3, 3) OIHW; conv_b: (C,);
    gamma, beta: (W,). Returns (N, C, H, W)."""
    N, C, H, W = x.shape
    f32 = jnp.float32

    # Keep >= 2 parallel grid steps when N == 1 (feeds both v7x TensorCores).
    if row_tile is None:
        row_tile = H
        if N == 1 and H % 2 == 0 and ((H // 2) * W) % 128 == 0:
            row_tile = H // 2
    if H % row_tile != 0:
        raise ValueError("row_tile must divide H")
    TH = row_tile
    T = H // TH
    THW = TH * W
    if T > 1 and THW % 128 != 0:
        raise ValueError("row_tile * W must be a multiple of 128 when tiling rows")

    Cp = ((C + 7) // 8) * 8                      # channel dim padded to sublane multiple
    Kf = 9 * Cp + 8                              # fused contraction dim (+ bias block)
    Lfull = (H + 2) * W                          # row-padded, flattened length
    BAND2 = (TH + 2) * W + 2                     # band length incl. +-1 lane halo
    Lpad = ((Lfull + 2 + 127) // 128) * 128      # 128-lane-aligned HBM layout

    # ---- input prep: channel pad + row pad, flatten rows into lanes, +-1 lane pad ----
    xp = jnp.pad(x.astype(f32), ((0, 0), (0, Cp - C), (1, 1), (0, 0)))   # (N,Cp,H+2,W)
    xf = xp.reshape(N, Cp, Lfull)
    xf = jnp.pad(xf, ((0, 0), (0, 0), (1, Lpad - Lfull - 1)))            # (N,Cp,Lpad)

    # ---- fused conv weight: (Cp, 9*Cp) tap-major + bias column, zero-padded ----
    w9 = jnp.transpose(conv_w.astype(f32), (2, 3, 0, 1)).reshape(9, C, C)  # (k, cout, cin)
    w9 = jnp.pad(w9, ((0, 0), (0, 0), (0, Cp - C)))                        # pad cin
    w_flat = jnp.transpose(w9, (1, 0, 2)).reshape(C, 9 * Cp)               # (C, 9*Cp)
    bias_blk = jnp.pad(conv_b.astype(f32).reshape(C, 1), ((0, 0), (0, 7)))  # (C, 8)
    w_fused = jnp.concatenate([w_flat, bias_blk], axis=1)                  # (C, Kf)
    w_fused = jnp.pad(w_fused, ((0, Cp - C), (0, 0)))                      # (Cp, Kf)

    # ---- resident constants: column masks, block-averaging matrix, gamma/beta ----
    col = np.arange(THW) % W
    row_id = np.arange(THW) // W
    ml = jnp.asarray((col != 0).astype(np.float32)).reshape(1, THW)
    mr = jnp.asarray((col != W - 1).astype(np.float32)).reshape(1, THW)
    P = jnp.asarray((row_id[:, None] == row_id[None, :]).astype(np.float32) / W)
    gt = jnp.tile(gamma.astype(f32).reshape(1, W), (1, TH))
    bt = jnp.tile(beta.astype(f32).reshape(1, W), (1, TH))

    param_shapes = [(Cp, Kf), (1, THW), (1, THW), (THW, THW), (1, THW), (1, THW)]

    if T == 1:
        # Whole image per grid step; BlockSpec auto-pipelining, zero glue.
        def kernel_full(x_ref, w_ref, ml_ref, mr_ref, p_ref, g_ref, be_ref,
                        o_ref, taps_ref):
            o_ref[0] = _conv_ln_relu(x_ref[0], taps_ref, w_ref, ml_ref, mr_ref,
                                     p_ref, g_ref, be_ref, W, o_ref.dtype)

        out = pl.pallas_call(
            kernel_full,
            out_shape=jax.ShapeDtypeStruct((N, Cp, H * W), f32),
            grid=(N,),
            in_specs=[pl.BlockSpec((1, Cp, Lpad), lambda n: (n, 0, 0))]
                     + [pl.BlockSpec(s, lambda n: (0, 0)) for s in param_shapes],
            out_specs=pl.BlockSpec((1, Cp, THW), lambda n: (n, 0, 0)),
            scratch_shapes=[pltpu.VMEM((Kf, THW), f32)],
            compiler_params=pltpu.CompilerParams(
                dimension_semantics=("parallel",)),
        )(xf, w_fused, ml, mr, P, gt, bt)
    else:
        # Row-banded: overlapping (TH+2)*W+2 windows fetched by manual DMA from
        # the single HBM-resident flattened array (no duplicated halo bands).
        def kernel_banded(x_hbm, w_ref, ml_ref, mr_ref, p_ref, g_ref, be_ref,
                          o_ref, band_ref, taps_ref, sem):
            n = pl.program_id(0)
            t = pl.program_id(1)
            off = pl.multiple_of(t * THW, 128)
            dma = pltpu.make_async_copy(
                x_hbm.at[n, :, pl.ds(off, BAND2)], band_ref, sem)
            dma.start()
            dma.wait()
            o_ref[0] = _conv_ln_relu(band_ref[...], taps_ref, w_ref, ml_ref,
                                     mr_ref, p_ref, g_ref, be_ref, W, o_ref.dtype)

        out = pl.pallas_call(
            kernel_banded,
            out_shape=jax.ShapeDtypeStruct((N, Cp, H * W), f32),
            grid=(N, T),
            in_specs=[pl.BlockSpec(memory_space=pl.ANY)]
                     + [pl.BlockSpec(s, lambda n, t: (0, 0)) for s in param_shapes],
            out_specs=pl.BlockSpec((1, Cp, THW), lambda n, t: (n, 0, t)),
            scratch_shapes=[pltpu.VMEM((Cp, BAND2), f32),
                            pltpu.VMEM((Kf, THW), f32),
                            pltpu.SemaphoreType.DMA],
            compiler_params=pltpu.CompilerParams(
                dimension_semantics=("parallel", "parallel")),
        )(xf, w_fused, ml, mr, P, gt, bt)

    # Drop channel padding, free metadata reshape back to NCHW.
    return out[:, :C, :].reshape(N, C, H, W)


def identity_block_reference(x, conv_w, conv_b, gamma, beta):
    """Pure-JAX reference replicating the PyTorch forward."""
    out = jax.lax.conv_general_dilated(
        x, conv_w, window_strides=(1, 1), padding=((1, 1), (1, 1)),
        dimension_numbers=("NCHW", "OIHW", "NCHW"))
    out = out + conv_b[None, :, None, None]
    mean = out.mean(axis=-1, keepdims=True)
    var = ((out - mean) ** 2).mean(axis=-1, keepdims=True)
    out = (out - mean) / jnp.sqrt(var + LN_EPS) * gamma + beta
    return jnp.maximum(out, 0.0)


if __name__ == "__main__":
    # Small shapes consistent with the module: t_size (channels) = 4,
    # n_step (normalized last dim) = 16, batch = 2, H = 16.
    N, C, H, W = 2, 4, 16, 16

    key = jax.random.PRNGKey(0)
    k_x, k_w, k_b, k_g, k_be = jax.random.split(key, 5)

    x = jax.random.normal(k_x, (N, C, H, W), dtype=jnp.float32)
    conv_w = 0.1 * jax.random.normal(k_w, (C, C, 3, 3), dtype=jnp.float32)
    conv_b = 0.1 * jax.random.normal(k_b, (C,), dtype=jnp.float32)
    gamma = 1.0 + 0.05 * jax.random.normal(k_g, (W,), dtype=jnp.float32)
    beta = 0.05 * jax.random.normal(k_be, (W,), dtype=jnp.float32)

    ref = identity_block_reference(x, conv_w, conv_b, gamma, beta)

    # Default path: whole image per grid step, grid = (N,) = 2 parallel steps.
    out = jax.block_until_ready(
        jax.jit(identity_block_forward)(x, conv_w, conv_b, gamma, beta))
    np.testing.assert_allclose(np.asarray(out), np.asarray(ref),
                               rtol=1e-4, atol=1e-4)

    # Row-banded path (TH = 8, grid = (N, 2)) exercising the manual-DMA halo fetch.
    out8 = jax.block_until_ready(
        jax.jit(lambda *a: identity_block_forward(*a, row_tile=8))(
            x, conv_w, conv_b, gamma, beta))
    np.testing.assert_allclose(np.asarray(out8), np.asarray(ref),
                               rtol=1e-4, atol=1e-4)

    print("KERNEL_OK")
</pallas_src>

<mosaic_0001>
module attributes {stable_mosaic.version = 11 : i64} {
  func.func @kernel_full(%arg0: i32, %arg1: memref<1x8x384xf32, #tpu.memory_space<vmem>>, %arg2: memref<8x80xf32, #tpu.memory_space<vmem>>, %arg3: memref<1x256xf32, #tpu.memory_space<vmem>>, %arg4: memref<1x256xf32, #tpu.memory_space<vmem>>, %arg5: memref<256x256xf32, #tpu.memory_space<vmem>>, %arg6: memref<1x256xf32, #tpu.memory_space<vmem>>, %arg7: memref<1x256xf32, #tpu.memory_space<vmem>>, %arg8: memref<1x8x256xf32, #tpu.memory_space<vmem>>, %arg9: memref<80x256xf32, #tpu.memory_space<vmem>>) attributes {dimension_semantics = [#tpu.dimension_semantics<parallel>], iteration_bounds = array<i64: 2>, scalar_prefetch = 0 : i64, scratch_operands = 1 : i64, tpu.core_type = #tpu.core_type<tc>, window_params = [{transform_indices = @transform_0, window_bounds = array<i64: 1, 8, 384>}, {pipeline_mode = #tpu.pipeline_mode<synchronous>, transform_indices = @transform_1, window_bounds = array<i64: 8, 80>}, {pipeline_mode = #tpu.pipeline_mode<synchronous>, transform_indices = @transform_2, window_bounds = array<i64: 1, 256>}, {pipeline_mode = #tpu.pipeline_mode<synchronous>, transform_indices = @transform_3, window_bounds = array<i64: 1, 256>}, {pipeline_mode = #tpu.pipeline_mode<synchronous>, transform_indices = @transform_4, window_bounds = array<i64: 256, 256>}, {pipeline_mode = #tpu.pipeline_mode<synchronous>, transform_indices = @transform_5, window_bounds = array<i64: 1, 256>}, {pipeline_mode = #tpu.pipeline_mode<synchronous>, transform_indices = @transform_6, window_bounds = array<i64: 1, 256>}, {transform_indices = @transform_7, window_bounds = array<i64: 1, 8, 256>}]} {
    %c0 = arith.constant 0 : index
    %c0_0 = arith.constant 0 : index
    %c0_1 = arith.constant 0 : index
    %0 = vector.load %arg1[%c0, %c0_0, %c0_1] : memref<1x8x384xf32, #tpu.memory_space<vmem>>, vector<1x8x384xf32>
    %1 = vector.shape_cast %0 : vector<1x8x384xf32> to vector<8x384xf32>
    %c0_2 = arith.constant 0 : index
    %c0_3 = arith.constant 0 : index
    %2 = vector.load %arg3[%c0_2, %c0_3] : memref<1x256xf32, #tpu.memory_space<vmem>>, vector<1x256xf32>
    %c0_4 = arith.constant 0 : index
    %c0_5 = arith.constant 0 : index
    %3 = vector.load %arg4[%c0_4, %c0_5] : memref<1x256xf32, #tpu.memory_space<vmem>>, vector<1x256xf32>
    %4 = vector.extract_strided_slice %1 {offsets = [0, 0], sizes = [8, 256], strides = [1, 1]} : vector<8x384xf32> to vector<8x256xf32>
    %5 = vector.broadcast %2 : vector<1x256xf32> to vector<8x256xf32>
    %6 = arith.mulf %4, %5 : vector<8x256xf32>
    %c0_6 = arith.constant 0 : index
    %c0_7 = arith.constant 0 : index
    %7 = vector.load %arg9[%c0_6, %c0_7] : memref<80x256xf32, #tpu.memory_space<vmem>>, vector<8x256xf32>
    tpu.vector_store %arg9[%c0_6, %c0_7], %6 {strides = array<i32>} : memref<80x256xf32, #tpu.memory_space<vmem>>, vector<8x256xf32>,
    %8 = vector.extract_strided_slice %1 {offsets = [0, 1], sizes = [8, 256], strides = [1, 1]} : vector<8x384xf32> to vector<8x256xf32>
    %c8 = arith.constant 8 : index
    %c0_8 = arith.constant 0 : index
    %9 = vector.load %arg9[%c8, %c0_8] : memref<80x256xf32, #tpu.memory_space<vmem>>, vector<8x256xf32>
    tpu.vector_store %arg9[%c8, %c0_8], %8 {strides = array<i32>} : memref<80x256xf32, #tpu.memory_space<vmem>>, vector<8x256xf32>,
    %10 = vector.extract_strided_slice %1 {offsets = [0, 2], sizes = [8, 256], strides = [1, 1]} : vector<8x384xf32> to vector<8x256xf32>
    %11 = vector.broadcast %3 : vector<1x256xf32> to vector<8x256xf32>
    %12 = arith.mulf %10, %11 : vector<8x256xf32>
    %c16 = arith.constant 16 : index
    %c0_9 = arith.constant 0 : index
    %13 = vector.load %arg9[%c16, %c0_9] : memref<80x256xf32, #tpu.memory_space<vmem>>, vector<8x256xf32>
    tpu.vector_store %arg9[%c16, %c0_9], %12 {strides = array<i32>} : memref<80x256xf32, #tpu.memory_space<vmem>>, vector<8x256xf32>,
    %14 = vector.extract_strided_slice %1 {offsets = [0, 16], sizes = [8, 256], strides = [1, 1]} : vector<8x384xf32> to vector<8x256xf32>
    %15 = vector.broadcast %2 : vector<1x256xf32> to vector<8x256xf32>
    %16 = arith.mulf %14, %15 : vector<8x256xf32>
    %c24 = arith.constant 24 : index
    %c0_10 = arith.constant 0 : index
    %17 = vector.load %arg9[%c24, %c0_10] : memref<80x256xf32, #tpu.memory_space<vmem>>, vector<8x256xf32>
    tpu.vector_store %arg9[%c24, %c0_10], %16 {strides = array<i32>} : memref<80x256xf32, #tpu.memory_space<vmem>>, vector<8x256xf32>,
    %18 = vector.extract_strided_slice %1 {offsets = [0, 17], sizes = [8, 256], strides = [1, 1]} : vector<8x384xf32> to vector<8x256xf32>
    %c32 = arith.constant 32 : index
    %c0_11 = arith.constant 0 : index
    %19 = vector.load %arg9[%c32, %c0_11] : memref<80x256xf32, #tpu.memory_space<vmem>>, vector<8x256xf32>
    tpu.vector_store %arg9[%c32, %c0_11], %18 {strides = array<i32>} : memref<80x256xf32, #tpu.memory_space<vmem>>, vector<8x256xf32>,
    %20 = vector.extract_strided_slice %1 {offsets = [0, 18], sizes = [8, 256], strides = [1, 1]} : vector<8x384xf32> to vector<8x256xf32>
    %21 = vector.broadcast %3 : vector<1x256xf32> to vector<8x256xf32>
    %22 = arith.mulf %20, %21 : vector<8x256xf32>
    %c40 = arith.constant 40 : index
    %c0_12 = arith.constant 0 : index
    %23 = vector.load %arg9[%c40, %c0_12] : memref<80x256xf32, #tpu.memory_space<vmem>>, vector<8x256xf32>
    tpu.vector_store %arg9[%c40, %c0_12], %22 {strides = array<i32>} : memref<80x256xf32, #tpu.memory_space<vmem>>, vector<8x256xf32>,
    %24 = vector.extract_strided_slice %1 {offsets = [0, 32], sizes = [8, 256], strides = [1, 1]} : vector<8x384xf32> to vector<8x256xf32>
    %25 = vector.broadcast %2 : vector<1x256xf32> to vector<8x256xf32>
    %26 = arith.mulf %24, %25 : vector<8x256xf32>
    %c48 = arith.constant 48 : index
    %c0_13 = arith.constant 0 : index
    %27 = vector.load %arg9[%c48, %c0_13] : memref<80x256xf32, #tpu.memory_space<vmem>>, vector<8x256xf32>
    tpu.vector_store %arg9[%c48, %c0_13], %26 {strides = array<i32>} : memref<80x256xf32, #tpu.memory_space<vmem>>, vector<8x256xf32>,
    %28 = vector.extract_strided_slice %1 {offsets = [0, 33], sizes = [8, 256], strides = [1, 1]} : vector<8x384xf32> to vector<8x256xf32>
    %c56 = arith.constant 56 : index
    %c0_14 = arith.constant 0 : index
    %29 = vector.load %arg9[%c56, %c0_14] : memref<80x256xf32, #tpu.memory_space<vmem>>, vector<8x256xf32>
    tpu.vector_store %arg9[%c56, %c0_14], %28 {strides = array<i32>} : memref<80x256xf32, #tpu.memory_space<vmem>>, vector<8x256xf32>,
    %30 = vector.extract_strided_slice %1 {offsets = [0, 34], sizes = [8, 256], strides = [1, 1]} : vector<8x384xf32> to vector<8x256xf32>
    %31 = vector.broadcast %3 : vector<1x256xf32> to vector<8x256xf32>
    %32 = arith.mulf %30, %31 : vector<8x256xf32>
    %c64 = arith.constant 64 : index
    %c0_15 = arith.constant 0 : index
    %33 = vector.load %arg9[%c64, %c0_15] : memref<80x256xf32, #tpu.memory_space<vmem>>, vector<8x256xf32>
    tpu.vector_store %arg9[%c64, %c0_15], %32 {strides = array<i32>} : memref<80x256xf32, #tpu.memory_space<vmem>>, vector<8x256xf32>,
    %cst = arith.constant 1.000000e+00 : f32
    %34 = vector.broadcast %cst : f32 to vector<8x256xf32>
    %c72 = arith.constant 72 : index
    %c0_16 = arith.constant 0 : index
    %35 = vector.load %arg9[%c72, %c0_16] : memref<80x256xf32, #tpu.memory_space<vmem>>, vector<8x256xf32>
    tpu.vector_store %arg9[%c72, %c0_16], %34 {strides = array<i32>} : memref<80x256xf32, #tpu.memory_space<vmem>>, vector<8x256xf32>,
    %c0_17 = arith.constant 0 : index
    %c0_18 = arith.constant 0 : index
    %36 = vector.load %arg2[%c0_17, %c0_18] : memref<8x80xf32, #tpu.memory_space<vmem>>, vector<8x80xf32>
    %c0_19 = arith.constant 0 : index
    %c0_20 = arith.constant 0 : index
    %37 = vector.load %arg9[%c0_19, %c0_20] : memref<80x256xf32, #tpu.memory_space<vmem>>, vector<80x256xf32>
    %cst_21 = arith.constant dense<0.000000e+00> : vector<8x256xf32>
    %38 = tpu.matmul %36, %37, %cst_21 {dimension_numbers = #tpu.dot_dimension_numbers<[1], [0], [0], [1], [0, 0, 1, 1], [], []>} : vector<8x80xf32>, vector<80x256xf32>, vector<8x256xf32> -> vector<8x256xf32>
    %c0_22 = arith.constant 0 : index
    %c0_23 = arith.constant 0 : index
    %39 = vector.load %arg5[%c0_22, %c0_23] : memref<256x256xf32, #tpu.memory_space<vmem>>, vector<256x256xf32>
    %cst_24 = arith.constant dense<0.000000e+00> : vector<8x256xf32>
    %40 = tpu.matmul %38, %39, %cst_24 {dimension_numbers = #tpu.dot_dimension_numbers<[1], [0], [0], [1], [0, 0, 1, 1], [], []>} : vector<8x256xf32>, vector<256x256xf32>, vector<8x256xf32> -> vector<8x256xf32>
    %41 = arith.subf %38, %40 : vector<8x256xf32>
    %42 = arith.mulf %41, %41 : vector<8x256xf32>
    %c0_25 = arith.constant 0 : index
    %c0_26 = arith.constant 0 : index
    %43 = vector.load %arg5[%c0_25, %c0_26] : memref<256x256xf32, #tpu.memory_space<vmem>>, vector<256x256xf32>
    %cst_27 = arith.constant dense<0.000000e+00> : vector<8x256xf32>
    %44 = tpu.matmul %42, %43, %cst_27 {dimension_numbers = #tpu.dot_dimension_numbers<[1], [0], [0], [1], [0, 0, 1, 1], [], []>} : vector<8x256xf32>, vector<256x256xf32>, vector<8x256xf32> -> vector<8x256xf32>
    %cst_28 = arith.constant 9.99999974E-6 : f32
    %45 = vector.broadcast %cst_28 : f32 to vector<8x256xf32>
    %46 = arith.addf %44, %45 : vector<8x256xf32>
    %47 = math.rsqrt %46 : vector<8x256xf32>
    %48 = arith.mulf %41, %47 : vector<8x256xf32>
    %c0_29 = arith.constant 0 : index
    %c0_30 = arith.constant 0 : index
    %49 = vector.load %arg6[%c0_29, %c0_30] : memref<1x256xf32, #tpu.memory_space<vmem>>, vector<1x256xf32>
    %50 = vector.broadcast %49 : vector<1x256xf32> to vector<8x256xf32>
    %51 = arith.mulf %48, %50 : vector<8x256xf32>
    %c0_31 = arith.constant 0 : index
    %c0_32 = arith.constant 0 : index
    %52 = vector.load %arg7[%c0_31, %c0_32] : memref<1x256xf32, #tpu.memory_space<vmem>>, vector<1x256xf32>
    %53 = vector.broadcast %52 : vector<1x256xf32> to vector<8x256xf32>
    %54 = arith.addf %51, %53 : vector<8x256xf32>
    %cst_33 = arith.constant 0.000000e+00 : f32
    %55 = vector.broadcast %cst_33 : f32 to vector<8x256xf32>
    %56 = arith.maximumf %54, %55 : vector<8x256xf32>
    %c0_34 = arith.constant 0 : index
    %c0_35 = arith.constant 0 : index
    %c0_36 = arith.constant 0 : index
    %57 = vector.load %arg8[%c0_34, %c0_35, %c0_36] : memref<1x8x256xf32, #tpu.memory_space<vmem>>, vector<1x8x256xf32>
    %58 = vector.shape_cast %57 : vector<1x8x256xf32> to vector<8x256xf32>
    %59 = vector.shape_cast %56 : vector<8x256xf32> to vector<1x8x256xf32>
    tpu.vector_store %arg8[%c0_34, %c0_35, %c0_36], %59 {strides = array<i32>} : memref<1x8x256xf32, #tpu.memory_space<vmem>>, vector<1x8x256xf32>,
    return
  }
  func.func @transform_0(%arg0: i32) -> (i32, i32, i32) {
    %c0_i32 = arith.constant 0 : i32
    %c0_i32_0 = arith.constant 0 : i32
    %c0_i32_1 = arith.constant 0 : i32
    return %arg0, %c0_i32, %c0_i32_0 : i32, i32, i32
  }
  func.func @transform_1(%arg0: i32) -> (i32, i32) {
    %c0_i32 = arith.constant 0 : i32
    %c0_i32_0 = arith.constant 0 : i32
    %c0_i32_1 = arith.constant 0 : i32
    return %c0_i32, %c0_i32_0 : i32, i32
  }
  func.func @transform_2(%arg0: i32) -> (i32, i32) {
    %c0_i32 = arith.constant 0 : i32
    %c0_i32_0 = arith.constant 0 : i32
    %c0_i32_1 = arith.constant 0 : i32
    return %c0_i32, %c0_i32_0 : i32, i32
  }
  func.func @transform_3(%arg0: i32) -> (i32, i32) {
    %c0_i32 = arith.constant 0 : i32
    %c0_i32_0 = arith.constant 0 : i32
    %c0_i32_1 = arith.constant 0 : i32
    return %c0_i32, %c0_i32_0 : i32, i32
  }
  func.func @transform_4(%arg0: i32) -> (i32, i32) {
    %c0_i32 = arith.constant 0 : i32
    %c0_i32_0 = arith.constant 0 : i32
    %c0_i32_1 = arith.constant 0 : i32
    return %c0_i32, %c0_i32_0 : i32, i32
  }
  func.func @transform_5(%arg0: i32) -> (i32, i32) {
    %c0_i32 = arith.constant 0 : i32
    %c0_i32_0 = arith.constant 0 : i32
    %c0_i32_1 = arith.constant 0 : i32
    return %c0_i32, %c0_i32_0 : i32, i32
  }
  func.func @transform_6(%arg0: i32) -> (i32, i32) {
    %c0_i32 = arith.constant 0 : i32
    %c0_i32_0 = arith.constant 0 : i32
    %c0_i32_1 = arith.constant 0 : i32
    return %c0_i32, %c0_i32_0 : i32, i32
  }
  func.func @transform_7(%arg0: i32) -> (i32, i32, i32) {
    %c0_i32 = arith.constant 0 : i32
    %c0_i32_0 = arith.constant 0 : i32
    %c0_i32_1 = arith.constant 0 : i32
    return %arg0, %c0_i32, %c0_i32_0 : i32, i32, i32
  }
}

</mosaic_0001>

<bundles_post_ra>
// kernel: identity_block_forward.1
= control target key start
LH: loop header
LB: loop body
LE: loop exit
PB: predicated region body
PF: predicated region fallthrough
CT: control target
= control target key end

     0   :  { %s1180_s24 = smov 0   ;;  %s1587_s0 = inlined_call_operand.vmem [shape: f32[2,8,384], index: 0, kind: input, shape index: {}]   ;;  %s1588_s1 = inlined_call_operand.vmem [shape: f32[8,80], index: 1, kind: input, shape index: {}]   ;;  %s1589_s2 = inlined_call_operand.vmem [shape: f32[1,256], index: 2, kind: input, shape index: {}]   ;;  %s1590_s3 = inlined_call_operand.vmem [shape: f32[1,256], index: 3, kind: input, shape index: {}]   ;;  %s1591_s4 = inlined_call_operand.vmem [shape: f32[256,256], index: 4, kind: input, shape index: {}]   ;;  %s1592_s5 = inlined_call_operand.vmem [shape: f32[1,256], index: 5, kind: input, shape index: {}]   ;;  %s1593_s6 = inlined_call_operand.vmem [shape: f32[1,256], index: 6, kind: input, shape index: {}]   ;;  %s1594_s7 = inlined_call_operand.vmem [shape: f32[2,8,256], index: 7, kind: output, shape index: {}]  }
   0x1 LB: > { %s889_s25 = sadd.s32 4294967295, %s1123_s24   ;;  %p893_p0 = scmp.ge.s32.totalorder %s1123_s24, 1  ;;  %s1123_s24 = sphi %s1180_s24, %s17_s24  }
   0x2   : > { %p237_p1 = scmp.lt.s32.totalorder %s1123_s24, 3 }
   0x4   : > { %p238_p2 = pnand %p893_p0, %p237_p1 }
   0x5   : > { %v285_v0 = vlaneseq (!%p238_p2)  ;;  %v283_v2 = vld [vmem:[%s1590_s3] sm:$0x3] (!%p238_p2)  ;;  %p269_p3 = scmp.lt.s32.totalorder (!%p238_p2), %s889_s25, 1  ;;  %s1125_s30 = smov (!%p238_p2), 2   ;;  %vm328_vm0 = vcmask (!%p238_p2), 15360   ;;  %vm356_vm1 = vcmask (!%p238_p2), 130048  }
   0x6   : > { %241 = sbr.rel (%p238_p2) target bundleno = 946 (0x3b2), region = 48  ;;  %v282_v3 = vld [vmem:[%s1589_s2] sm:$0x3] (!%p238_p2)  ;;  %s1126_s8 = smov (!%p238_p2), 16   ;;  %vm397_vm2 = vcmask (!%p238_p2), 146432   ;;  %vm425_vm3 = vcmask (!%p238_p2), 261120  }
   0x7   : > { %v286_v1 = vshrl.u32 (!%p238_p2), %v285_v0, 7  ;;  %s1127_s10 = smov (!%p238_p2), 18   ;;  %s1128_s14 = smov (!%p238_p2), 32   ;;  %vm466_vm4 = vcmask (!%p238_p2), 277504   ;;  %vm308_vm5 = vcmask (!%p238_p2), 1039360   ;;  %v1136_v54 = vmov (!%p238_p2), 0.0  }
   0x8   : > { %s1129_s15 = smov (!%p238_p2), 34   ;;  %s1130_s16 = smov (!%p238_p2), 127   ;;  %581 = vmatprep.mubr.f32.mxu0 (!%p238_p2), %v1136_v54  ;;  %v589_v59 = vld [vmem:[%s1591_s4 + $0x8] sm:$0xff] (!%p238_p2)  ;;  %v591_v60 = vld [vmem:[%s1591_s4 + $0x18] sm:$0xff] (!%p238_p2)  ;;  %v588_v61 = vld [vmem:[%s1591_s4] sm:$0xff] (!%p238_p2)  ;;  %vm345_vm6 = vcmask (!%p238_p2), 1031168  }
   0x9   : > { %v1194_v4 = vsub.s32 (!%p238_p2), 0, %v286_v1  ;;  %v1196_v5 = vsub.s32 (!%p238_p2), 1, %v286_v1  ;;  %s1131_s17 = smov (!%p238_p2), 111   ;;  %s1132_s18 = smov (!%p238_p2), 126   ;;  %v1251_v62 = vpack.c.bf16 (!%p238_p2), %v591_v60, %v589_v59  ;;  %v590_v63 = vld [vmem:[%s1591_s4 + $0x10] sm:$0xff] (!%p238_p2)  ;;  %v593_v0 = vld [vmem:[%s1591_s4 + $0x28] sm:$0xff] (!%p238_p2) }
   0xa   : > { %s1133_s19 = smov (!%p238_p2), 112   ;;  %s1134_s20 = smov (!%p238_p2), 110   ;;  %v595_v1 = vld [vmem:[%s1591_s4 + $0x38] sm:$0xff] (!%p238_p2)  ;;  %vm373_vm7 = vcmask (!%p238_p2), 916480   ;;  %vm386_vm8 = vcmask (!%p238_p2), 908288   ;;  %vm414_vm9 = vcmask (!%p238_p2), 900096  }
   0xb   : > { %v319_v6 = vrot.slane (!%p238_p2), %v283_v2, %v1194_v4  ;;  %v1200_v7 = vrot.slane (!%p238_p2), %v282_v3, %v1194_v4  ;;  %v323_v8 = vrot.slane (!%p238_p2), %v283_v2, %v1196_v5  ;;  %v1205_v9 = vrot.slane (!%p238_p2), %v282_v3, %v1196_v5  ;;  %s1135_s21 = smov (!%p238_p2), 96   ;;  %s1137_s22 = smov (!%p238_p2), 95   ;;  %922 = vmatprep.subr.bf16.mxu1 (!%p238_p2), %v1251_v62 }
   0xc   : > { %s1138_s23 = smov (!%p238_p2), 94   ;;  %v1262_v2 = vpack.c.bf16 (!%p238_p2), %v590_v63, %v588_v61  ;;  %v1264_v3 = vpack.c.bf16 (!%p238_p2), %v595_v1, %v593_v0  ;;  %v628_v61 = vld [vmem:[%s1591_s4 + $0x140] sm:$0xff] (!%p238_p2)  ;;  %v630_v63 = vld [vmem:[%s1591_s4 + $0x150] sm:$0xff] (!%p238_p2)  ;;  %v633_v0 = vld [vmem:[%s1591_s4 + $0x168] sm:$0xff] (!%p238_p2)  ;;  %vm442_vm10 = vcmask (!%p238_p2), 785408   ;;  %vm455_vm11 = vcmask (!%p238_p2), 777216  }
   0xd   : > { %324 = vrot.lane.b32.xlu0 %v319_v6, %s1125_s30  ;;  %352 = vrot.lane.b32.xlu1 %v1200_v7, %s1126_s8  ;;  %s1596_s25 = smov (!%p269_p3, %s889_s25), 1  ;;  %v635_v1 = vld [vmem:[%s1591_s4 + $0x178] sm:$0xff]  ;;  %vm483_vm12 = vcmask 769024   ;;  %vm513_vm13 = vcmask 654336  }
   0xe   : > { %s1049_s9 = smul.u32 24, %s1596_s25  ;;  %924 = vmatpush1.bf16.msra.mxu1 %v1262_v2  ;;  %s900_s12 = sshll.u32 %s1596_s25, 4 }
   0xf   : > { %926 = vmatprep.subr.bf16.mxu1 %v1264_v3 }
  0x10   : > { %s273_s13 = scalar_lea.vmem %s1587_s0, %s1049_s9 }
  0x11   : > { %326 = vrot.lane.b32.xlu0 %v323_v8, %s1125_s30  ;;  %354 = vrot.lane.b32.xlu1 %v1205_v9, %s1126_s8  ;;  %v1216_v10 = vld [vmem:[%s273_s13 + $0x8] sm:$0xff]  ;;  %v281_v11 = vld [vmem:[%s273_s13 + $0x10] sm:$0xff] }
  0x12   : > { %v1219_v12 = vpack.i.bf16 %v281_v11, %v1216_v10  ;;  %v1221_v13 = vld [vmem:[%s273_s13] sm:$0xff]  ;;  %v296_v50 = vmul.f32 %v1205_v9, %v1216_v10 }
  0x13   : > { %v295_v51 = vmul.f32 %v1200_v7, %v1221_v13 }
  0x15   : > { %393 = vrot.lane.b32.xlu0 %v319_v6, %s1127_s10  ;;  %395 = vrot.lane.b32.xlu1 %v323_v8, %s1127_s10 }
  0x19   : > { %421 = vrot.lane.b32.xlu0 %v1200_v7, %s1128_s14  ;;  %423 = vrot.lane.b32.xlu1 %v1205_v9, %s1128_s14  ;;  %v594_v7 = vld [vmem:[%s1591_s4 + $0x30] sm:$0xff]  ;;  %v599_v9 = vld [vmem:[%s1591_s4 + $0x58] sm:$0xff]  ;;  %s278_s14 = scalar_lea.vmem %s1594_s7, %s900_s12 }
  0x1d   : > { %462 = vrot.lane.b32.xlu0 %v319_v6, %s1129_s15  ;;  %464 = vrot.lane.b32.xlu1 %v323_v8, %s1129_s15  ;;  %v592_v6 = vld [vmem:[%s1591_s4 + $0x20] sm:$0xff]  ;;  %v597_v8 = vld [vmem:[%s1591_s4 + $0x48] sm:$0xff] }
  0x21   : > { %1074 = vrot.lane.b32.xlu0 %v1219_v12, %s1130_s16  ;;  %302 = vrot.lane.b32.xlu1 %v1221_v13, %s1130_s16 }
  0x25   : > { %1079 = vrot.lane.b32.xlu0 %v1219_v12, %s1131_s17 }
  0x29   : > { %380 = vrot.lane.b32.xlu0 %v1221_v13, %s1131_s17 }
  0x7f   : > { %v325_v14 = vpop.permute.xlu0 %324  ;;  %v353_v15 = vpop.permute.xlu1 %352 }
  0x80   : > { %v333_v16 = vmul.f32 %v325_v14, %v1221_v13  ;;  %v361_v17 = vmul.f32 %v353_v15, %v1221_v13 }
  0x82   : > { %339 = vrot.lane.b32.xlu0 %v333_v16, %s1132_s18  ;;  %367 = vrot.lane.b32.xlu1 %v361_v17, %s1133_s19  ;;  %v603_v16 = vld [vmem:[%s1591_s4 + $0x78] sm:$0xff] }
  0x83   : > { %v327_v18 = vpop.permute.xlu0 %326  ;;  %v355_v19 = vpop.permute.xlu1 %354 }
  0x84   : > { %v329_v20 = vsel %vm328_vm0, %v325_v14, %v327_v18  ;;  %v335_v21 = vmul.f32 %v327_v18, %v281_v11  ;;  %v357_v22 = vsel %vm356_vm1, %v353_v15, %v355_v19  ;;  %v363_v26 = vmul.f32 %v355_v19, %v281_v11  ;;  %v596_v14 = vld [vmem:[%s1591_s4 + $0x40] sm:$0xff]  ;;  %v598_v15 = vld [vmem:[%s1591_s4 + $0x50] sm:$0xff] }
  0x85   : > { %v334_v23 = vmul.f32 %v329_v20, %v1216_v10  ;;  %v362_v25 = vmul.f32 %v357_v22, %v1216_v10  ;;  %v1301_v17 = vpack.c.bf16 %v598_v15, %v596_v14  ;;  %v600_v19 = vld [vmem:[%s1591_s4 + $0x60] sm:$0xff]  ;;  %v602_v20 = vld [vmem:[%s1591_s4 + $0x70] sm:$0xff]  ;;  %v607_v22 = vld [vmem:[%s1591_s4 + $0x98] sm:$0xff] }
  0x86   : > { %v639_v14 = vld [vmem:[%s1591_s4 + $0x198] sm:$0xff] }
  0x87   : > { %v1083_v24 = vpack.i.bf16 %v335_v21, %v334_v23  ;;  %v394_v27 = vpop.permute.xlu0 %393  ;;  %v396_v28 = vpop.permute.xlu1 %395  ;;  %v1088_v31 = vpack.i.bf16 %v363_v26, %v362_v25  ;;  %v605_v21 = vld [vmem:[%s1591_s4 + $0x88] sm:$0xff]  ;;  %v1319_v23 = vpack.c.bf16 %v602_v20, %v600_v19  ;;  %v604_v25 = vld [vmem:[%s1591_s4 + $0x80] sm:$0xff]  ;;  %v606_v26 = vld [vmem:[%s1591_s4 + $0x90] sm:$0xff] }
  0x88   : > { %v402_v29 = vmul.f32 %v394_v27, %v1221_v13  ;;  %v398_v30 = vsel %vm397_vm2, %v394_v27, %v396_v28  ;;  %v404_v32 = vmul.f32 %v396_v28, %v281_v11  ;;  %v609_v27 = vld [vmem:[%s1591_s4 + $0xa8] sm:$0xff]  ;;  %v611_v28 = vld [vmem:[%s1591_s4 + $0xb8] sm:$0xff]  ;;  %v638_v19 = vld [vmem:[%s1591_s4 + $0x190] sm:$0xff] }
  0x89   : > { %1084 = vrot.lane.b32.xlu0 %v1083_v24, %s1132_s18  ;;  %v403_v35 = vmul.f32 %v398_v30, %v1216_v10  ;;  %v1322_v24 = vpack.c.bf16 %v607_v22, %v605_v21  ;;  %v1340_v30 = vpack.c.bf16 %v611_v28, %v609_v27  ;;  %v641_v20 = vld [vmem:[%s1591_s4 + $0x1a8] sm:$0xff]  ;;  %v643_v21 = vld [vmem:[%s1591_s4 + $0x1b8] sm:$0xff]  ;;  %v642_v27 = vld [vmem:[%s1591_s4 + $0x1b0] sm:$0xff] }
  0x8a   : > { %408 = vrot.lane.b32.xlu1 %v402_v29, %s1134_s20  ;;  %v1337_v29 = vpack.c.bf16 %v606_v26, %v604_v25  ;;  %v1484_v25 = vpack.c.bf16 %v643_v21, %v641_v20  ;;  %v640_v26 = vld [vmem:[%s1591_s4 + $0x1a0] sm:$0xff]  ;;  %v645_v28 = vld [vmem:[%s1591_s4 + $0x1c8] sm:$0xff] }
  0x8b   : > { %v422_v33 = vpop.permute.xlu0 %421  ;;  %v424_v34 = vpop.permute.xlu1 %423  ;;  %v1093_v43 = vpack.i.bf16 %v404_v32, %v403_v35  ;;  %v610_v32 = vld [vmem:[%s1591_s4 + $0xb0] sm:$0xff] }
  0x8c   : > { %v430_v36 = vmul.f32 %v422_v33, %v1221_v13  ;;  %v426_v37 = vsel %vm425_vm3, %v422_v33, %v424_v34  ;;  %v432_v38 = vmul.f32 %v424_v34, %v281_v11  ;;  %v613_v33 = vld [vmem:[%s1591_s4 + $0xc8] sm:$0xff]  ;;  %v615_v34 = vld [vmem:[%s1591_s4 + $0xd8] sm:$0xff] }
  0x8d   : > { %v431_v39 = vmul.f32 %v426_v37, %v1216_v10  ;;  %v612_v37 = vld [vmem:[%s1591_s4 + $0xc0] sm:$0xff] }
  0x8e   : > { %1089 = vrot.lane.b32.xlu1 %v1088_v31, %s1133_s19  ;;  %436 = vrot.lane.b32.xlu0 %v430_v36, %s1135_s21  ;;  %v608_v31 = vld [vmem:[%s1591_s4 + $0xa0] sm:$0xff]  ;;  %v1358_v36 = vpack.c.bf16 %v615_v34, %v613_v33 }
  0x8f   : > { %v1103_v40 = vpack.i.bf16 %v432_v38, %v431_v39  ;;  %v463_v41 = vpop.permute.xlu0 %462  ;;  %v465_v42 = vpop.permute.xlu1 %464  ;;  %v1355_v35 = vpack.c.bf16 %v610_v32, %v608_v31  ;;  %v614_v38 = vld [vmem:[%s1591_s4 + $0xd0] sm:$0xff]  ;;  %v617_v39 = vld [vmem:[%s1591_s4 + $0xe8] sm:$0xff]  ;;  %v647_v31 = vld [vmem:[%s1591_s4 + $0x1d8] sm:$0xff]  ;;  %v1499_v32 = vpack.c.bf16 %v642_v27, %v640_v26 }
  0x90   : > { %v467_v44 = vsel %vm466_vm4, %v463_v41, %v465_v42  ;;  %v473_v45 = vmul.f32 %v465_v42, %v281_v11  ;;  %v1282_v11 = vpack.c.bf16 %v594_v7, %v592_v6  ;;  %v1445_v6 = vpack.c.bf16 %v630_v63, %v628_v61  ;;  %v644_v34 = vld [vmem:[%s1591_s4 + $0x1c0] sm:$0xff] }
  0x91   : > { %v472_v46 = vmul.f32 %v467_v44, %v1216_v10  ;;  %v471_v10 = vmul.f32 %v463_v41, %v1221_v13  ;;  %v1373_v41 = vpack.c.bf16 %v614_v38, %v612_v37  ;;  %v618_v44 = vld [vmem:[%s1591_s4 + $0xf0] sm:$0xff]  ;;  %v1448_v7 = vpack.c.bf16 %v635_v1, %v633_v0  ;;  %v649_v38 = vld [vmem:[%s1591_s4 + $0x1e8] sm:$0xff] }
  0x92   : > { %1094 = vrot.lane.b32.xlu1 %v1093_v43, %s1134_s20  ;;  %1104 = vrot.lane.b32.xlu0 %v1103_v40, %s1135_s21  ;;  %v619_v40 = vld [vmem:[%s1591_s4 + $0xf8] sm:$0xff]  ;;  %v616_v43 = vld [vmem:[%s1591_s4 + $0xe0] sm:$0xff]  ;;  %v1502_v33 = vpack.c.bf16 %v647_v31, %v645_v28 }
  0x93   : > { %v1108_v47 = vpack.i.bf16 %v473_v45, %v472_v46  ;;  %v1075_v48 = vpop.permute.xlu0 %1074  ;;  %v303_v49 = vpop.permute.xlu1 %302  ;;  %928 = vmatpush1.bf16.msra.mxu1 %v1282_v11  ;;  %v1376_v42 = vpack.c.bf16 %v619_v40, %v617_v39  ;;  %v621_v45 = vld [vmem:[%s1591_s4 + $0x108] sm:$0xff]  ;;  %v623_v46 = vld [vmem:[%s1591_s4 + $0x118] sm:$0xff]  ;;  %v646_v37 = vld [vmem:[%s1591_s4 + $0x1d0] sm:$0xff] }
  0x94   : > { %v1077_v52 = vunpack.i.h.bf16 %v1075_v48  ;;  %v1076_v53 = vunpack.i.l.bf16 %v1075_v48  ;;  %v1394_v48 = vpack.c.bf16 %v623_v46, %v621_v45  ;;  %v651_v39 = vld [vmem:[%s1591_s4 + $0x1f8] sm:$0xff]  ;;  %v1517_v40 = vpack.c.bf16 %v646_v37, %v644_v34 }
  0x96   : > { %1099 = vrot.lane.b32.xlu1 %v1219_v12, %s1137_s22  ;;  %1109 = vrot.lane.b32.xlu0 %v1108_v47, %s1138_s23  ;;  %v309_v55 = vsel %vm308_vm5, %v303_v49, %v1076_v53  ;;  %v310_v56 = vsel %vm308_vm5, %v1076_v53, %v1077_v52  ;;  %v1285_v12 = vpack.c.bf16 %v599_v9, %v597_v8  ;;  %v620_v49 = vld [vmem:[%s1591_s4 + $0x100] sm:$0xff]  ;;  %v627_v52 = vld [vmem:[%s1591_s4 + $0x138] sm:$0xff] }
  0x97   : > { %v901_v57 = vpack.c.bf16 %v310_v56, %v296_v50  ;;  %v903_v58 = vpack.c.bf16 %v309_v55, %v295_v51  ;;  %v1391_v47 = vpack.c.bf16 %v618_v44, %v616_v43  ;;  %v622_v50 = vld [vmem:[%s1591_s4 + $0x110] sm:$0xff]  ;;  %v625_v51 = vld [vmem:[%s1591_s4 + $0x128] sm:$0xff]  ;;  %v624_v55 = vld [vmem:[%s1591_s4 + $0x120] sm:$0xff]  ;;  %v1520_v43 = vpack.c.bf16 %v651_v39, %v649_v38  ;;  %v1080_v44 = vpop.permute.xlu0 %1079 }
  0x98   : > { %930 = vmatprep.subr.bf16.mxu1 %v1285_v12  ;;  %v1409_v53 = vpack.c.bf16 %v622_v50, %v620_v49  ;;  %v1412_v54 = vpack.c.bf16 %v627_v52, %v625_v51  ;;  %v626_v56 = vld [vmem:[%s1591_s4 + $0x130] sm:$0xff]  ;;  %v632_v8 = vld [vmem:[%s1591_s4 + $0x160] sm:$0xff]  ;;  %v1082_v63 = vunpack.i.h.bf16 %v1080_v44  ;;  %v1081_v0 = vunpack.i.l.bf16 %v1080_v44 }
  0x99   : > { %902 = vmatprep.subr.bf16.mxu0 %v901_v57  ;;  %932 = vmatpush1.bf16.msra.mxu1 %v1301_v17  ;;  %v629_v57 = vld [vmem:[%s1591_s4 + $0x148] sm:$0xff]  ;;  %v1427_v59 = vpack.c.bf16 %v626_v56, %v624_v55  ;;  %v634_v9 = vld [vmem:[%s1591_s4 + $0x170] sm:$0xff] }
  0x9a   : > { %449 = vrot.lane.b32.xlu1 %v1221_v13, %s1137_s22  ;;  %904 = vmatpush1.bf16.msra.mxu0 %v903_v58  ;;  %v601_v13 = vld [vmem:[%s1591_s4 + $0x68] sm:$0xff]  ;;  %v631_v58 = vld [vmem:[%s1591_s4 + $0x158] sm:$0xff]  ;;  %v1463_v15 = vpack.c.bf16 %v634_v9, %v632_v8  ;;  %v388_v34 = vsel %vm386_vm8, %v1081_v0, %v1082_v63 }
  0x9b   : > { %v1304_v18 = vpack.c.bf16 %v603_v16, %v601_v13  ;;  %v1430_v60 = vpack.c.bf16 %v631_v58, %v629_v57  ;;  %v636_v16 = vld [vmem:[%s1591_s4 + $0x180] sm:$0xff]  ;;  %v381_v45 = vpop.permute.xlu0 %380 }
  0x9c   : > { %v1481_v22 = vpack.c.bf16 %v638_v19, %v636_v16  ;;  %v387_v31 = vsel %vm386_vm8, %v381_v45, %v1081_v0 }
  0x9d   : > { %934 = vmatprep.subr.bf16.mxu1 %v1304_v18 }
  0x9e   : > { %477 = vrot.lane.b32.xlu1 %v471_v10, %s1138_s23  ;;  %936 = vmatpush1.bf16.msra.mxu1 %v1319_v23  ;;  %v637_v10 = vld [vmem:[%s1591_s4 + $0x188] sm:$0xff] }
  0x9f   : > { %938 = vmatprep.subr.bf16.mxu1 %v1322_v24  ;;  %v1466_v13 = vpack.c.bf16 %v639_v14, %v637_v10 }
  0xa2   : > { %940 = vmatpush1.bf16.msra.mxu1 %v1337_v29 }
  0xa3   : > { %942 = vmatprep.subr.bf16.mxu1 %v1340_v30 }
  0xa6   : > { %944 = vmatpush1.bf16.msra.mxu1 %v1355_v35 }
  0xa7   : > { %946 = vmatprep.subr.bf16.mxu1 %v1358_v36 }
  0xaa   : > { %948 = vmatpush1.bf16.msra.mxu1 %v1373_v41 }
  0xab   : > { %950 = vmatprep.subr.bf16.mxu1 %v1376_v42 }
  0xae   : > { %952 = vmatpush1.bf16.msra.mxu1 %v1391_v47 }
  0xaf   : > { %954 = vmatprep.subr.bf16.mxu1 %v1394_v48 }
  0xb2   : > { %956 = vmatpush1.bf16.msra.mxu1 %v1409_v53 }
  0xb3   : > { %958 = vmatprep.subr.bf16.mxu1 %v1412_v54 }
  0xb6   : > { %960 = vmatpush1.bf16.msra.mxu1 %v1427_v59 }
  0xb7   : > { %962 = vmatprep.subr.bf16.mxu1 %v1430_v60 }
  0xba   : > { %964 = vmatpush1.bf16.msra.mxu1 %v1445_v6 }
  0xbb   : > { %966 = vmatprep.subr.bf16.mxu1 %v1448_v7 }
  0xbe   : > { %968 = vmatpush1.bf16.msra.mxu1 %v1463_v15 }
  0xbf   : > { %970 = vmatprep.subr.bf16.mxu1 %v1466_v13 }
  0xc2   : > { %972 = vmatpush1.bf16.msra.mxu1 %v1481_v22 }
  0xc3   : > { %974 = vmatprep.subr.bf16.mxu1 %v1484_v25 }
  0xc6   : > { %976 = vmatpush1.bf16.msra.mxu1 %v1499_v32 }
  0xc7   : > { %978 = vmatprep.subr.bf16.mxu1 %v1502_v33 }
  0xca   : > { %980 = vmatpush1.bf16.msra.mxu1 %v1517_v40 }
  0xcb   : > { %982 = vmatprep.subr.bf16.mxu1 %v1520_v43 }
  0xf4   : > { %v368_v46 = vpop.permute.xlu1 %367  ;;  %v340_v49 = vpop.permute.xlu0 %339 }
  0xfb   : > { %v1085_v50 = vpop.permute.xlu0 %1084 }
  0xfc   : > { %v409_v51 = vpop.permute.xlu1 %408  ;;  %v1087_v52 = vunpack.i.h.bf16 %v1085_v50  ;;  %v1086_v55 = vunpack.i.l.bf16 %v1085_v50 }
  0xfe   : > { %v347_v1 = vsel %vm345_vm6, %v1086_v55, %v1087_v52  ;;  %v346_v9 = vsel %vm345_vm6, %v340_v49, %v1086_v55 }
 0x100   : > { %v1090_v56 = vpop.permute.xlu1 %1089  ;;  %v437_v57 = vpop.permute.xlu0 %436 }
 0x101   : > { %v1092_v58 = vunpack.i.h.bf16 %v1090_v56  ;;  %v1091_v61 = vunpack.i.l.bf16 %v1090_v56 }
 0x103   : > { %v375_v8 = vsel %vm373_vm7, %v1091_v61, %v1092_v58  ;;  %v374_v10 = vsel %vm373_vm7, %v368_v46, %v1091_v61 }
 0x104   : > { %v1095_v14 = vpop.permute.xlu1 %1094  ;;  %v1105_v16 = vpop.permute.xlu0 %1104  ;;  %v905_v19 = vpack.c.bf16 %v375_v8, %v347_v1  ;;  %v907_v20 = vpack.c.bf16 %v374_v10, %v346_v9  ;;  %v1139_v8 = vmov 1.0  }
 0x105   : > { %v1097_v21 = vunpack.i.h.bf16 %v1095_v14  ;;  %v1096_v26 = vunpack.i.l.bf16 %v1095_v14  ;;  %v1107_v27 = vunpack.i.h.bf16 %v1105_v16  ;;  %v1106_v28 = vunpack.i.l.bf16 %v1105_v16 }
 0x106   : > { %906 = vmatprep.subr.bf16.mxu0 %v905_v19 }
 0x107   : > { %908 = vmatpush1.bf16.msra.mxu0 %v907_v20  ;;  %v416_v37 = vsel %vm414_vm9, %v1096_v26, %v1097_v21  ;;  %v415_v38 = vsel %vm414_vm9, %v409_v51, %v1096_v26  ;;  %v444_v50 = vsel %vm442_vm10, %v1106_v28, %v1107_v27  ;;  %v443_v51 = vsel %vm442_vm10, %v437_v57, %v1106_v28  ;;  %v492_v20 = vld [vmem:[%s1588_s1] sm:$0xff] }
 0x108   : > { %v1100_v39 = vpop.permute.xlu1 %1099  ;;  %v909_v44 = vpack.c.bf16 %v416_v37, %v388_v34  ;;  %v911_v46 = vpack.c.bf16 %v415_v38, %v387_v31  ;;  %v1110_v49 = vpop.permute.xlu0 %1109 }
 0x109   : > { %v1102_v52 = vunpack.i.h.bf16 %v1100_v39  ;;  %v1101_v55 = vunpack.i.l.bf16 %v1100_v39  ;;  %v1112_v56 = vunpack.i.h.bf16 %v1110_v49  ;;  %v1111_v58 = vunpack.i.l.bf16 %v1110_v49 }
 0x10a   : > { %910 = vmatprep.subr.bf16.mxu0 %v909_v44 }
 0x10b   : > { %912 = vmatpush1.bf16.msra.mxu0 %v911_v46  ;;  %v457_v61 = vsel %vm455_vm11, %v1101_v55, %v1102_v52  ;;  %v485_v45 = vsel %vm483_vm12, %v1111_v58, %v1112_v56 }
 0x10c   : > { %v450_v63 = vpop.permute.xlu1 %449  ;;  %v913_v0 = vpack.c.bf16 %v457_v61, %v444_v50  ;;  %v917_v9 = vpack.c.bf16 %v1139_v8, %v485_v45 }
 0x10d   : > { %v456_v1 = vsel %vm455_vm11, %v450_v63, %v1101_v55 }
 0x10e   : > { %v915_v10 = vpack.c.bf16 %v456_v1, %v443_v51  ;;  %914 = vmatprep.subr.bf16.mxu0 %v913_v0 }
 0x110   : > { %v478_v14 = vpop.permute.xlu1 %477  ;;  %916 = vmatpush1.bf16.msra.mxu0 %v915_v10 }
 0x111   : > { %v484_v16 = vsel %vm483_vm12, %v478_v14, %v1111_v58  ;;  %918 = vmatprep.subr.bf16.mxu0 %v917_v9 }
 0x112   : > { %v919_v19 = vpack.c.bf16 %v1139_v8, %v484_v16 }
 0x114   : > { %920 = vmatpush1.bf16.msra.mxu0 %v919_v19 }
 0x115   : > { %986 = vmatprep.subr.bf16.mxu0 %v1251_v62  ;;  %v648_v62 = vld [vmem:[%s1591_s4 + $0x1e0] sm:$0xff] }
 0x117   : > { %897 = vmatmul.mubr.msk.f32.vlgmr.msra.gmra.mrb[0].mxu0 %vm513_vm13, %v492_v20 }
 0x118   : > { %988 = vmatpush1.bf16.msra.mxu0 %v1262_v2  ;;  %v650_v2 = vld [vmem:[%s1591_s4 + $0x1f0] sm:$0xff] }
 0x119   : > { %990 = vmatprep.subr.bf16.mxu0 %v1264_v3  ;;  %v983_v3 = vpack.c.bf16 %v650_v2, %v648_v62 }
 0x11b   : > { %984 = vmatpush1.bf16.msra.mxu1 %v983_v3 }
 0x11c   : > { %992 = vmatpush1.bf16.msra.mxu0 %v1282_v11 }
 0x11d   : > { %994 = vmatprep.subr.bf16.mxu0 %v1285_v12 }
 0x120   : > { %996 = vmatpush1.bf16.msra.mxu0 %v1301_v17 }
 0x121   : > { %998 = vmatprep.subr.bf16.mxu0 %v1304_v18 }
 0x124   : > { %1000 = vmatpush1.bf16.msra.mxu0 %v1319_v23 }
 0x125   : > { %1002 = vmatprep.subr.bf16.mxu0 %v1322_v24 }
 0x128   : > { %1004 = vmatpush1.bf16.msra.mxu0 %v1337_v29 }
 0x129   : > { %1006 = vmatprep.subr.bf16.mxu0 %v1340_v30 }
 0x12c   : > { %1008 = vmatpush1.bf16.msra.mxu0 %v1355_v35 }
 0x12d   : > { %1010 = vmatprep.subr.bf16.mxu0 %v1358_v36 }
 0x130   : > { %1012 = vmatpush1.bf16.msra.mxu0 %v1373_v41 }
 0x131   : > { %1014 = vmatprep.subr.bf16.mxu0 %v1376_v42 }
 0x134   : > { %1016 = vmatpush1.bf16.msra.mxu0 %v1391_v47  ;;  %v802_v47 = vld [vmem:[%s1592_s5] sm:$0x3] }
 0x135   : > { %1018 = vmatprep.subr.bf16.mxu0 %v1394_v48  ;;  %v816_v48 = vld [vmem:[%s1593_s6] sm:$0x3] }
 0x138   : > { %1020 = vmatpush1.bf16.msra.mxu0 %v1409_v53  ;;  %v807_v53 = vrot.slane %v802_v47, %v1194_v4 }
 0x139   : > { %1022 = vmatprep.subr.bf16.mxu0 %v1412_v54 }
 0x13c   : > { %1024 = vmatpush1.bf16.msra.mxu0 %v1427_v59  ;;  %v811_v59 = vrot.slane %v802_v47, %v1196_v5 }
 0x13d   : > { %1026 = vmatprep.subr.bf16.mxu0 %v1430_v60 }
 0x140   : > { %1028 = vmatpush1.bf16.msra.mxu0 %v1445_v6 }
 0x141   : > { %1030 = vmatprep.subr.bf16.mxu0 %v1448_v7  ;;  %v821_v7 = vrot.slane %v816_v48, %v1194_v4 }
 0x144   : > { %1032 = vmatpush1.bf16.msra.mxu0 %v1463_v15 }
 0x145   : > { %1034 = vmatprep.subr.bf16.mxu0 %v1466_v13  ;;  %v825_v13 = vrot.slane %v816_v48, %v1196_v5 }
 0x148   : > { %1036 = vmatpush1.bf16.msra.mxu0 %v1481_v22 }
 0x149   : > { %1038 = vmatprep.subr.bf16.mxu0 %v1484_v25 }
 0x14c   : > { %1040 = vmatpush1.bf16.msra.mxu0 %v1499_v32 }
 0x14d   : > { %1042 = vmatprep.subr.bf16.mxu0 %v1502_v33 }
 0x150   : > { %1044 = vmatpush1.bf16.msra.mxu0 %v1517_v40 }
 0x151   : > { %1046 = vmatprep.subr.bf16.mxu0 %v1520_v43 }
 0x154   : > { %1048 = vmatpush1.bf16.msra.mxu0 %v983_v3 }
 0x1ea   : > { %v583_v11 = vpop.f32.mrb[0].mxu0 }
 0x1eb   : > { %v585_v12 = vpop.f32.mrb[1].mxu0 }
 0x1ec   : > { %716 = vmatprep.mubr.f32.mxu1 %v585_v12 }
 0x1ed   : > { %717 = vmatmul.mubr.f32.vlgmr.msra.gmra.mrb[0].mxu1 %v583_v11 }
 0x2c0   : > { %v718_v17 = vpop.f32.mrb[0].mxu1 }
 0x2c1   : > { %v723_v18 = vsub.f32 %v583_v11, %v718_v17  ;;  %v720_v23 = vpop.f32.mrb[1].mxu1 }
 0x2c2   : > { %v724_v24 = vsub.f32 %v585_v12, %v720_v23 }
 0x2c3   : > { %v725_v30 = vmul.f32 %v723_v18, %v723_v18 }
 0x2c4   : > { %v726_v29 = vmul.f32 %v724_v24, %v724_v24 }
 0x2c6   : > { %791 = vmatprep.mubr.f32.mxu0 %v726_v29 }
 0x2c7   : > { %792 = vmatmul.mubr.f32.vlgmr.msra.gmra.mrb[2].mxu0 %v725_v30 }
 0x39a   : > { %v793_v35 = vpop.f32.mrb[2].mxu0 }
 0x39b   : > { %v794_v36 = vadd.f32 1e-05, %v793_v35  ;;  %v795_v41 = vpop.f32.mrb[3].mxu0 }
 0x39c   : > { %v796_v42 = vadd.f32 1e-05, %v795_v41 }
 0x39d   : > { %1113 = vrsqrt.f32 %v794_v36 }
 0x39e   : > { %1115 = vrsqrt.f32 %v796_v42 }
 0x3a7   : > { %v1114_v54 = vpop.eup %1113 }
 0x3a8   : > { %v1116_v60 = vpop.eup %1115  ;;  %v800_v6 = vmul.f32 %v1114_v54, %v723_v18 }
 0x3a9   : > { %v801_v15 = vmul.f32 %v1116_v60, %v724_v24 }
 0x3aa   : > { %v814_v22 = vmul.f32 %v807_v53, %v800_v6 }
 0x3ab   : > { %v815_v25 = vmul.f32 %v811_v59, %v801_v15 }
 0x3ac   : > { %v828_v32 = vadd.f32 %v821_v7, %v814_v22 }
 0x3ad   : > { %v829_v33 = vadd.f32 %v825_v13, %v815_v25 }
 0x3ae   : > { %v830_v40 = vmax.f32 %v828_v32, 0.0 }
 0x3af   : > { %v831_v43 = vmax.f32 %v829_v33, 0.0 }
 0x3b0   : > { %832 = vst [vmem:[%s278_s14] sm:$0xff] %v830_v40 }
 0x3b1   : > { %833 = vst [vmem:[%s278_s14 + $0x8] sm:$0xff] %v831_v43 }
 0x3b2 PF: > { %s17_s24 = sadd.s32 1, %s1123_s24  }
 0x3b3   : > { %p14_p4 = scmp.ge.s32.totalorder %s17_s24, 4  }
 0x3b5   :  { %16 = sbr.rel (!%p14_p4) target bundleno = 1 (0x1), region = 78 }

</bundles_post_ra>
